<compile_context>
chip_gen: v5e
topology: v5e:2x2
jax: 0.10.0
libtpu: 0.0.40
codegen_flags: <defaults>
</compile_context>

<pallas_src>
import functools

import jax
import jax.numpy as jnp
from jax.experimental import pallas as pl
from jax.experimental.pallas import tpu as pltpu


def _round_up(n, m):
    return ((n + m - 1) // m) * m


def _cat_embed_kernel(mask_ref, x_ref, w1_ref, b1_ref, w2_ref, b2_ref, o_ref):
    # mask_ref: (TB, 1)  f32, 1.0 where the condition is dropped
    # x_ref:    (TB, D_in) f32
    # w1_ref:   (D_in, 4H) bf16, b1_ref: (1, 4H) f32
    # w2_ref:   (4H, H)    bf16, b2_ref: (1, H)  f32
    # o_ref:    (TB, H)
    keep = 1.0 - mask_ref[...]                        # (TB, 1), lane-broadcasts
    x = (x_ref[...] * keep).astype(w1_ref.dtype)      # zero dropped rows, bf16 for MXU

    # Linear 1 (MXU, f32 accumulate) + bias
    h = jnp.dot(x, w1_ref[...], preferred_element_type=jnp.float32)
    h = h + b1_ref[...]

    # SiLU in f32: h * sigmoid(h); reciprocal on the approx EUP path.
    sig = pl.reciprocal(1.0 + jnp.exp(-h), approx=True)
    h = h * sig

    # Linear 2 (MXU, f32 accumulate) + bias
    out = jnp.dot(h.astype(w2_ref.dtype), w2_ref[...],
                  preferred_element_type=jnp.float32)
    o_ref[...] = (out + b2_ref[...]).astype(o_ref.dtype)


def _derive_vmem_limit(tb, d_in, ff, h):
    # bf16 weights + f32 biases, double-buffered (conservative), plus
    # double-buffered activation tiles and headroom.
    weight_bytes = (d_in * ff + ff * h) * 2 + (ff + h) * 4
    act_bytes = tb * (d_in + h + 1) * 4
    need = 2 * weight_bytes + 2 * act_bytes + (4 << 20)
    return int(min(max(need, 8 << 20), 64 << 20))


def categorical_embedder_pallas(x, force_drop_id, params, *, training,
                                drop_condition, rng_key=None, batch_tile=256):
    """x: (B, D_in) float32; force_drop_id: (B,) bool."""
    B, D_in = x.shape
    w1, b1, w2, b2 = params                  # w1: (D_in, 4H), w2: (4H, H)
    FF = w1.shape[1]
    H = w2.shape[1]

    # --- drop mask (RNG glue stays in plain JAX) -------------------------
    mask = force_drop_id
    if training and drop_condition > 0:
        assert rng_key is not None
        drop_mask = jax.random.bernoulli(rng_key, p=drop_condition,
                                         shape=force_drop_id.shape)
        mask = jnp.logical_or(mask, drop_mask)
    mask_f = mask.astype(jnp.float32)[:, None]            # (B, 1)

    # --- weights: bf16 storage, f32 biases -------------------------------
    w1 = w1.astype(jnp.bfloat16)
    w2 = w2.astype(jnp.bfloat16)
    b1 = b1.astype(jnp.float32)[None, :]                   # (1, 4H)
    b2 = b2.astype(jnp.float32)[None, :]                   # (1, H)

    # --- batch tiling: multiple of 8 sublanes, MXU-sized cap -------------
    TB = min(_round_up(batch_tile, 8), _round_up(B, 8))
    pad_B = _round_up(B, TB)
    if pad_B != B:
        x = jnp.pad(x, ((0, pad_B - B), (0, 0)))
        mask_f = jnp.pad(mask_f, ((0, pad_B - B), (0, 0)))
    grid = (pad_B // TB,)

    # Activation blocks walk the batch; weight blocks are constant so the
    # pipeline keeps them VMEM-resident across grid steps.
    # TODO(synk): for production-sized H on v7x (64 MiB VMEM), also tile the
    # 4H dimension with an f32 accumulator + pl.when init/finalize, and use
    # pipeline_mode=pl.Buffered(1) on the weight specs.
    act_spec = lambda last: pl.BlockSpec((TB, last), lambda i: (i, 0))
    const_spec = lambda a: pl.BlockSpec(a.shape, lambda i: (0, 0))

    out = pl.pallas_call(
        _cat_embed_kernel,
        out_shape=jax.ShapeDtypeStruct((pad_B, H), x.dtype),
        grid=grid,
        in_specs=[
            act_spec(1),          # mask
            act_spec(D_in),       # x
            const_spec(w1),       # w1 (resident)
            const_spec(b1),       # b1 (resident)
            const_spec(w2),       # w2 (resident)
            const_spec(b2),       # b2 (resident)
        ],
        out_specs=act_spec(H),
        compiler_params=pltpu.CompilerParams(
            dimension_semantics=("parallel",),
            vmem_limit_bytes=_derive_vmem_limit(TB, D_in, FF, H),
        ),
    )(mask_f, x, w1, b1, w2, b2)

    return out[:B]


def _reference(x, force_drop_id, params):
    """Pure-JAX reference of the (deterministic) forward path."""
    w1, b1, w2, b2 = params
    x = jnp.where(force_drop_id[:, None], jnp.zeros_like(x), x)
    h = x @ w1 + b1
    h = h * jax.nn.sigmoid(h)
    return h @ w2 + b2


def _init_params(key, input_dims, hidden_size):
    """Deterministic param init (shapes follow nn.Linear; stored transposed)."""
    k1, k2, k3, k4 = jax.random.split(key, 4)
    w1 = jax.random.normal(k1, (input_dims, hidden_size * 4), jnp.float32) * 0.02
    b1 = jax.random.normal(k2, (hidden_size * 4,), jnp.float32) * 0.02
    w2 = jax.random.normal(k3, (hidden_size * 4, hidden_size), jnp.float32) * 0.02
    b2 = jax.random.normal(k4, (hidden_size,), jnp.float32) * 0.02
    return (w1, b1, w2, b2)


if __name__ == "__main__":
    B, input_dims, hidden_size = 8, 16, 32
    drop_condition = 0.1

    key = jax.random.PRNGKey(0)
    k_param, k_x, k_drop = jax.random.split(key, 3)

    params = _init_params(k_param, input_dims, hidden_size)
    x = jax.random.normal(k_x, (B, input_dims), jnp.float32)
    force_drop_id = jnp.array([False, True, False, False,
                               True, False, False, False], dtype=bool)

    # Reference uses the same bf16-rounded weights so only the compute path
    # (bf16 matmul w/ f32 accumulate, approx reciprocal) differs.
    w1, b1, w2, b2 = params
    params_q = (w1.astype(jnp.bfloat16).astype(jnp.float32), b1,
                w2.astype(jnp.bfloat16).astype(jnp.float32), b2)

    # Eval-mode (deterministic) run + correctness check against pure JAX.
    out_eval = categorical_embedder_pallas(
        x, force_drop_id, params, training=False,
        drop_condition=drop_condition)
    out_eval = jax.block_until_ready(out_eval)
    ref = _reference(x, force_drop_id, params_q)
    assert out_eval.shape == (B, hidden_size)
    assert jnp.allclose(out_eval, ref, atol=1e-2, rtol=1e-2)

    # Exercise the batch-padding path (B not a multiple of the tile/sublane).
    B2 = 10
    x2 = jax.random.normal(k_x, (B2, input_dims), jnp.float32)
    fd2 = jnp.zeros((B2,), dtype=bool).at[3].set(True)
    out2 = jax.block_until_ready(categorical_embedder_pallas(
        x2, fd2, params, training=False, drop_condition=drop_condition))
    ref2 = _reference(x2, fd2, params_q)
    assert out2.shape == (B2, hidden_size)
    assert jnp.allclose(out2, ref2, atol=1e-2, rtol=1e-2)

    # Training-mode run (random condition dropping) just to exercise the path.
    out_train = categorical_embedder_pallas(
        x, force_drop_id, params, training=True,
        drop_condition=drop_condition, rng_key=k_drop)
    jax.block_until_ready(out_train)

    print("KERNEL_OK")
</pallas_src>

<mosaic_0001>
module attributes {stable_mosaic.version = 11 : i64} {
  func.func @_cat_embed_kernel(%arg0: i32, %arg1: memref<8x1xf32, #tpu.memory_space<vmem>>, %arg2: memref<8x16xf32, #tpu.memory_space<vmem>>, %arg3: memref<16x128xbf16, #tpu.memory_space<vmem>>, %arg4: memref<1x128xf32, #tpu.memory_space<vmem>>, %arg5: memref<128x32xbf16, #tpu.memory_space<vmem>>, %arg6: memref<1x32xf32, #tpu.memory_space<vmem>>, %arg7: memref<8x32xf32, #tpu.memory_space<vmem>>) attributes {dimension_semantics = [#tpu.dimension_semantics<parallel>], iteration_bounds = array<i64: 1>, scalar_prefetch = 0 : i64, scratch_operands = 0 : i64, tpu.core_type = #tpu.core_type<tc>, window_params = [{transform_indices = @transform_0, window_bounds = array<i64: 8, 1>}, {transform_indices = @transform_1, window_bounds = array<i64: 8, 16>}, {pipeline_mode = #tpu.pipeline_mode<synchronous>, transform_indices = @transform_2, window_bounds = array<i64: 16, 128>}, {pipeline_mode = #tpu.pipeline_mode<synchronous>, transform_indices = @transform_3, window_bounds = array<i64: 1, 128>}, {pipeline_mode = #tpu.pipeline_mode<synchronous>, transform_indices = @transform_4, window_bounds = array<i64: 128, 32>}, {pipeline_mode = #tpu.pipeline_mode<synchronous>, transform_indices = @transform_5, window_bounds = array<i64: 1, 32>}, {transform_indices = @transform_6, window_bounds = array<i64: 8, 32>}]} {
    %c0 = arith.constant 0 : index
    %c0_0 = arith.constant 0 : index
    %0 = vector.load %arg1[%c0, %c0_0] : memref<8x1xf32, #tpu.memory_space<vmem>>, vector<8x1xf32>
    %cst = arith.constant 1.000000e+00 : f32
    %1 = vector.broadcast %cst : f32 to vector<8x1xf32>
    %2 = arith.subf %1, %0 : vector<8x1xf32>
    %c0_1 = arith.constant 0 : index
    %c0_2 = arith.constant 0 : index
    %3 = vector.load %arg2[%c0_1, %c0_2] : memref<8x16xf32, #tpu.memory_space<vmem>>, vector<8x16xf32>
    %4 = vector.broadcast %2 : vector<8x1xf32> to vector<8x16xf32>
    %5 = arith.mulf %3, %4 : vector<8x16xf32>
    %6 = arith.truncf %5 : vector<8x16xf32> to vector<8x16xbf16>
    %c0_3 = arith.constant 0 : index
    %c0_4 = arith.constant 0 : index
    %7 = vector.load %arg3[%c0_3, %c0_4] : memref<16x128xbf16, #tpu.memory_space<vmem>>, vector<16x128xbf16>
    %cst_5 = arith.constant dense<0.000000e+00> : vector<8x128xf32>
    %8 = tpu.matmul %6, %7, %cst_5 {dimension_numbers = #tpu.dot_dimension_numbers<[1], [0], [0], [1], [0, 0, 1, 1], [], []>} : vector<8x16xbf16>, vector<16x128xbf16>, vector<8x128xf32> -> vector<8x128xf32>
    %c0_6 = arith.constant 0 : index
    %c0_7 = arith.constant 0 : index
    %9 = vector.load %arg4[%c0_6, %c0_7] : memref<1x128xf32, #tpu.memory_space<vmem>>, vector<1x128xf32>
    %10 = vector.broadcast %9 : vector<1x128xf32> to vector<8x128xf32>
    %11 = arith.addf %8, %10 : vector<8x128xf32>
    %cst_8 = arith.constant 0.000000e+00 : f32
    %12 = vector.broadcast %cst_8 : f32 to vector<8x128xf32>
    %13 = arith.subf %12, %11 : vector<8x128xf32>
    %14 = math.exp %13 : vector<8x128xf32>
    %cst_9 = arith.constant 1.000000e+00 : f32
    %15 = vector.broadcast %cst_9 : f32 to vector<8x128xf32>
    %16 = arith.addf %15, %14 : vector<8x128xf32>
    %17 = tpu.reciprocal %16 {approx = true} : vector<8x128xf32> -> vector<8x128xf32>
    %18 = arith.mulf %11, %17 : vector<8x128xf32>
    %19 = arith.truncf %18 : vector<8x128xf32> to vector<8x128xbf16>
    %c0_10 = arith.constant 0 : index
    %c0_11 = arith.constant 0 : index
    %20 = vector.load %arg5[%c0_10, %c0_11] : memref<128x32xbf16, #tpu.memory_space<vmem>>, vector<128x32xbf16>
    %cst_12 = arith.constant dense<0.000000e+00> : vector<8x32xf32>
    %21 = tpu.matmul %19, %20, %cst_12 {dimension_numbers = #tpu.dot_dimension_numbers<[1], [0], [0], [1], [0, 0, 1, 1], [], []>} : vector<8x128xbf16>, vector<128x32xbf16>, vector<8x32xf32> -> vector<8x32xf32>
    %c0_13 = arith.constant 0 : index
    %c0_14 = arith.constant 0 : index
    %22 = vector.load %arg6[%c0_13, %c0_14] : memref<1x32xf32, #tpu.memory_space<vmem>>, vector<1x32xf32>
    %23 = vector.broadcast %22 : vector<1x32xf32> to vector<8x32xf32>
    %24 = arith.addf %21, %23 : vector<8x32xf32>
    %c0_15 = arith.constant 0 : index
    %c0_16 = arith.constant 0 : index
    %25 = vector.load %arg7[%c0_15, %c0_16] : memref<8x32xf32, #tpu.memory_space<vmem>>, vector<8x32xf32>
    tpu.vector_store %arg7[%c0_15, %c0_16], %24 {strides = array<i32>} : memref<8x32xf32, #tpu.memory_space<vmem>>, vector<8x32xf32>,
    return
  }
  func.func @transform_0(%arg0: i32) -> (i32, i32) {
    %c0_i32 = arith.constant 0 : i32
    %c0_i32_0 = arith.constant 0 : i32
    return %arg0, %c0_i32 : i32, i32
  }
  func.func @transform_1(%arg0: i32) -> (i32, i32) {
    %c0_i32 = arith.constant 0 : i32
    %c0_i32_0 = arith.constant 0 : i32
    return %arg0, %c0_i32 : i32, i32
  }
  func.func @transform_2(%arg0: i32) -> (i32, i32) {
    %c0_i32 = arith.constant 0 : i32
    %c0_i32_0 = arith.constant 0 : i32
    %c0_i32_1 = arith.constant 0 : i32
    return %c0_i32, %c0_i32_0 : i32, i32
  }
  func.func @transform_3(%arg0: i32) -> (i32, i32) {
    %c0_i32 = arith.constant 0 : i32
    %c0_i32_0 = arith.constant 0 : i32
    %c0_i32_1 = arith.constant 0 : i32
    return %c0_i32, %c0_i32_0 : i32, i32
  }
  func.func @transform_4(%arg0: i32) -> (i32, i32) {
    %c0_i32 = arith.constant 0 : i32
    %c0_i32_0 = arith.constant 0 : i32
    %c0_i32_1 = arith.constant 0 : i32
    return %c0_i32, %c0_i32_0 : i32, i32
  }
  func.func @transform_5(%arg0: i32) -> (i32, i32) {
    %c0_i32 = arith.constant 0 : i32
    %c0_i32_0 = arith.constant 0 : i32
    %c0_i32_1 = arith.constant 0 : i32
    return %c0_i32, %c0_i32_0 : i32, i32
  }
  func.func @transform_6(%arg0: i32) -> (i32, i32) {
    %c0_i32 = arith.constant 0 : i32
    %c0_i32_0 = arith.constant 0 : i32
    return %arg0, %c0_i32 : i32, i32
  }
}

</mosaic_0001>

<bundles_post_ra>
// kernel: tpu_custom_call.1
= control target key start
LH: loop header
LB: loop body
LE: loop exit
PB: predicated region body
PF: predicated region fallthrough
CT: control target
= control target key end

     0   :  { %v251_v1 = vmov 0   ;;  %s330_s0 = inlined_call_operand.vmem [shape: f32[8,1], index: 0, kind: input, shape index: {}]   ;;  %s331_s1 = inlined_call_operand.vmem [shape: f32[8,16], index: 1, kind: input, shape index: {}]   ;;  %s332_s2 = inlined_call_operand.vmem [shape: bf16[16,128], index: 2, kind: input, shape index: {}]   ;;  %s333_s3 = inlined_call_operand.vmem [shape: f32[1,128], index: 3, kind: input, shape index: {}]   ;;  %s334_s4 = inlined_call_operand.vmem [shape: bf16[128,32], index: 4, kind: input, shape index: {}]   ;;  %s335_s5 = inlined_call_operand.vmem [shape: f32[1,32], index: 5, kind: input, shape index: {}]   ;;  %s336_s6 = inlined_call_operand.hbm [shape: f32[8,32], index: 6, kind: output, shape index: {}]  }
   0x1   :  { %v25_v0 = vld [vmem:[%s330_s0] sm:$0xff]  ;;  %218 = vset.pattern.permute.xlu0 %v251_v1 }
   0x2   :  { %v26_v2 = vsub.f32 1.0, %v25_v0 }
   0x3   :  { %11 = vsyncpa [#allocation3], 0  ;;  %v207_v3 = vld [vmem:[%s332_s2] sm:$0xff]  ;;  %v215_v4 = vld [vmem:[%s334_s4 + $0x38] sm:$0xff]  ;;  %vm47_vm0 = vcmask 130048   ;;  %s252_s19 = smov [#allocation2]  }
   0x4   :  { %30 = vperm.xlu0 %218, %v26_v2   ;;  %58 = vmatpush.bf16.msra.mxu0 %v207_v3  ;;  %v27_v5 = vld [vmem:[%s331_s1] sm:$0xff]  ;;  %v214_v9 = vld [vmem:[%s334_s4 + $0x30] sm:$0xff]  ;;  %v213_v10 = vld [vmem:[%s334_s4 + $0x28] sm:$0xff]  ;;  %s159_s20 = sshll.u32 %s252_s19, 4  ;;  %s161_s22 = sshll.u32 %s336_s6, 4  ;;  %vm152_vm1 = vcmask 261120   ;;  %s160_s20 = int_to_ptr.vmem [resolvable:$true] %s159_s20  ;;  %s162_s22 = int_to_ptr.hbm [resolvable:$true] %s161_s22 }
   0x5   :  { %139 = vmatpush.bf16.msra.mxu1 %v215_v4  ;;  %v212_v11 = vld [vmem:[%s334_s4 + $0x20] sm:$0xff]  ;;  %v211_v12 = vld [vmem:[%s334_s4 + $0x18] sm:$0xff]  ;;  %v210_v13 = vld [vmem:[%s334_s4 + $0x10] sm:$0xff] }
   0x6   :  { %v209_v14 = vld [vmem:[%s334_s4 + $0x8] sm:$0xff]  ;;  %v208_v15 = vld [vmem:[%s334_s4] sm:$0xff] }
   0x7   :  { %v219_v16 = vld [vmem:[%s333_s3] ss:$0 sm:$0xff] }
   0x8   :  { %v220_v27 = vld [vmem:[%s335_s5] ss:$0 sm:$0xff] }
   0x9   :  { %140 = vmatpush.bf16.msra.mxu1 %v214_v9 }
   0xd   :  { %141 = vmatpush.bf16.msra.mxu1 %v213_v10 }
  0x11   :  { %142 = vmatpush.bf16.msra.mxu1 %v212_v11 }
  0x15   :  { %143 = vmatpush.bf16.msra.mxu1 %v211_v12 }
  0x19   :  { %144 = vmatpush.bf16.msra.mxu1 %v210_v13 }
  0x1d   :  { %145 = vmatpush.bf16.msra.mxu1 %v209_v14 }
  0x21   :  { %146 = vmatpush.bf16.msra.mxu1 %v208_v15 }
  0x76   :  { %v31_v6 = vpop.permute.xlu0 %30 }
  0x77   :  { %v33_v7 = vmul.f32 %v31_v6, %v27_v5 }
  0x79   :  { %v34_v8 = vpack.c.bf16 %v33_v7, %v33_v7 }
  0x7b   :  { %174 = vmatmul.msk.bf16.vlgmr.msra.gmra.mxu0 %vm47_vm0, %v34_v8 }
  0xf8   :  { %v60_v17 = vpop.f32.mrf.mxu0 }
  0xf9   :  { %v61_v18 = vadd.f32 %v219_v16, %v60_v17 }
  0xfb   :  { %v64_v19 = vsub.f32 0.0, %v61_v18 }
  0xfd   :  { %v65_v20 = vmul.f32 1.442695, %v64_v19 }
  0xff   :  { %221 = vpow2.f32 %v65_v20 }
 0x100   :  { %v62_v21 = vpop.f32.mrf.mxu0 }
 0x105   :  { %v222_v22 = vpop.eup %221 }
 0x106   :  { %v67_v23 = vadd.f32 1.0, %v222_v22 }
 0x108   :  { %223 = vrcp.f32 %v67_v23 }
 0x10e   :  { %v224_v24 = vpop.eup %223 }
 0x10f   :  { %v69_v25 = vmul.f32 %v224_v24, %v61_v18 }
 0x111   :  { %v70_v26 = vpack.c.bf16 %v69_v25, %v69_v25 }
 0x113   :  { %147 = vmatmul.bf16.vlgmr.msra.gmra.mxu1 %v70_v26 }
 0x190   :  { %v148_v28 = vpop.f32.mrf.mxu1 }
 0x191   :  { %v149_v29 = vadd.f32 %v220_v27, %v148_v28 }
 0x193   :  { %153 = vst.msk [vmem:[#allocation2] sm:$0xff] %vm152_vm1, %v149_v29 }
 0x194   :  { %164 = dma.vmem_to_hbm [thread:$0]  %s160_s20, 128, %s162_s22, [#allocation3]  }
 0x198   :  { %v150_v30 = vpop.f32.mrf.mxu1 }
 0x199   :  { %249 = dma.done.wait [#allocation3], 128  }
 0x19a   :  { %250 = vsyncadd [#allocation3], 4294967168 }
 0x19b   :  { %169 = vsyncpa [#allocation3], 1 }

</bundles_post_ra>
